<compile_context>
chip_gen: v7x
topology: tpu7x:2x2x1
jax: 0.10.0
libtpu: 0.0.40
codegen_flags: <defaults>
</compile_context>

<pallas_src>
import functools

import jax
import jax.numpy as jnp
import numpy as np
from jax.experimental import pallas as pl
from jax.experimental.pallas import tpu as pltpu


# ----------------------------- Pallas kernel -------------------------------


def _channel_attention_kernel(x_ref, w1_ref, w2_ref, o_ref, *, hw):
    """One batch element: global avg/max pool + fc1 -> ReLU -> fc2, add, sigmoid."""
    x = x_ref[0]                                             # (C, H*W), lane-dense
    w1 = w1_ref[...]                                         # (Cmid, C)
    w2 = w2_ref[...]                                         # (C, Cmid)

    avg = jnp.sum(x, axis=-1, keepdims=True) * (1.0 / hw)    # (C, 1) global avg pool
    mx = jnp.max(x, axis=-1, keepdims=True)                  # (C, 1) global max pool

    def squeeze_excite(p):                                   # p: (C, 1)
        h = jnp.maximum(jnp.dot(w1, p, preferred_element_type=jnp.float32), 0.0)
        return jnp.dot(w2, h, preferred_element_type=jnp.float32)   # (C, 1)

    s = squeeze_excite(avg) + squeeze_excite(mx)             # (C, 1)
    o_ref[0] = jax.nn.sigmoid(s)


# ----------------------------- Pallas wrapper -------------------------------


def channel_attention(x, fc1_w, fc2_w):
    """x: (N, C, H, W); fc1_w: (C//r, C, 1, 1); fc2_w: (C, C//r, 1, 1) -> (N, C, 1, 1)."""
    N, C, H, W = x.shape
    Cmid = fc1_w.shape[0]
    HW = H * W

    x_flat = x.reshape(N, C, HW)          # lane-dense last dim (multiple of 128)
    w1 = fc1_w.reshape(Cmid, C)           # 1x1 conv == channel matmul
    w2 = fc2_w.reshape(C, Cmid)

    kern = functools.partial(_channel_attention_kernel, hw=HW)
    out = pl.pallas_call(
        kern,
        out_shape=jax.ShapeDtypeStruct((N, C, 1), jnp.float32),
        grid=(N,),
        in_specs=[
            pl.BlockSpec((1, C, HW), lambda n: (n, 0, 0)),
            pl.BlockSpec((Cmid, C), lambda n: (0, 0)),
            pl.BlockSpec((C, Cmid), lambda n: (0, 0)),
        ],
        out_specs=pl.BlockSpec((1, C, 1), lambda n: (n, 0, 0)),
        compiler_params=pltpu.CompilerParams(dimension_semantics=("parallel",)),
    )(x_flat, w1, w2)
    return out.reshape(N, C, 1, 1)


# --------------------------- pure-JAX reference -----------------------------


def ref_forward(x, fc1_w, fc2_w):
    """Matches PyTorch ChannelAttention.forward (bias-free 1x1 convs)."""
    w1 = fc1_w.reshape(fc1_w.shape[0], fc1_w.shape[1])
    w2 = fc2_w.reshape(fc2_w.shape[0], fc2_w.shape[1])

    avg = jnp.mean(x, axis=(2, 3))                           # (N, C)
    mx = jnp.max(x, axis=(2, 3))                             # (N, C)

    def path(p):
        h = jnp.maximum(p @ w1.T, 0.0)                       # (N, Cmid)
        return h @ w2.T                                      # (N, C)

    out = jax.nn.sigmoid(path(avg) + path(mx))               # (N, C)
    return out[:, :, None, None]


# ----------------------------------- main -----------------------------------

if __name__ == "__main__":
    key = jax.random.PRNGKey(0)
    kx, k1, k2 = jax.random.split(key, 3)

    N, in_planes, ratio, H, W = 2, 32, 8, 16, 16
    mid = in_planes // ratio

    x = jax.random.normal(kx, (N, in_planes, H, W), dtype=jnp.float32)
    fc1_w = jax.random.normal(k1, (mid, in_planes, 1, 1), jnp.float32) / np.sqrt(in_planes)
    fc2_w = jax.random.normal(k2, (in_planes, mid, 1, 1), jnp.float32) / np.sqrt(mid)

    y = jax.block_until_ready(channel_attention(x, fc1_w, fc2_w))
    y_ref = jax.block_until_ready(ref_forward(x, fc1_w, fc2_w))

    assert y.shape == (N, in_planes, 1, 1), y.shape
    np.testing.assert_allclose(np.asarray(y), np.asarray(y_ref), rtol=2e-3, atol=2e-3)

    print("KERNEL_OK")
</pallas_src>

<mosaic_0001>
module attributes {stable_mosaic.version = 11 : i64} {
  func.func @_channel_attention_kernel(%arg0: i32, %arg1: memref<1x32x256xf32, #tpu.memory_space<vmem>>, %arg2: memref<4x32xf32, #tpu.memory_space<vmem>>, %arg3: memref<32x4xf32, #tpu.memory_space<vmem>>, %arg4: memref<1x32x1xf32, #tpu.memory_space<vmem>>) attributes {dimension_semantics = [#tpu.dimension_semantics<parallel>], iteration_bounds = array<i64: 2>, scalar_prefetch = 0 : i64, scratch_operands = 0 : i64, tpu.core_type = #tpu.core_type<tc>, window_params = [{transform_indices = @transform_0, window_bounds = array<i64: 1, 32, 256>}, {pipeline_mode = #tpu.pipeline_mode<synchronous>, transform_indices = @transform_1, window_bounds = array<i64: 4, 32>}, {pipeline_mode = #tpu.pipeline_mode<synchronous>, transform_indices = @transform_2, window_bounds = array<i64: 32, 4>}, {transform_indices = @transform_3, window_bounds = array<i64: 1, 32, 1>}]} {
    %c0 = arith.constant 0 : index
    %c0_0 = arith.constant 0 : index
    %c0_1 = arith.constant 0 : index
    %0 = vector.load %arg1[%c0, %c0_0, %c0_1] : memref<1x32x256xf32, #tpu.memory_space<vmem>>, vector<1x32x256xf32>
    %1 = vector.shape_cast %0 : vector<1x32x256xf32> to vector<32x256xf32>
    %c0_2 = arith.constant 0 : index
    %c0_3 = arith.constant 0 : index
    %2 = vector.load %arg2[%c0_2, %c0_3] : memref<4x32xf32, #tpu.memory_space<vmem>>, vector<4x32xf32>
    %c0_4 = arith.constant 0 : index
    %c0_5 = arith.constant 0 : index
    %3 = vector.load %arg3[%c0_4, %c0_5] : memref<32x4xf32, #tpu.memory_space<vmem>>, vector<32x4xf32>
    %cst = arith.constant dense<0.000000e+00> : vector<32xf32>
    %4 = vector.multi_reduction <add>, %1, %cst [1] : vector<32x256xf32> to vector<32xf32>
    %5 = vector.shape_cast %4 : vector<32xf32> to vector<32x1xf32>
    %cst_6 = arith.constant 3.906250e-03 : f32
    %6 = vector.broadcast %cst_6 : f32 to vector<32x1xf32>
    %7 = arith.mulf %5, %6 : vector<32x1xf32>
    %cst_7 = arith.constant dense<0xFF800000> : vector<32xf32>
    %8 = vector.multi_reduction <maximumf>, %1, %cst_7 [1] : vector<32x256xf32> to vector<32xf32>
    %9 = vector.shape_cast %8 : vector<32xf32> to vector<32x1xf32>
    %cst_8 = arith.constant dense<0.000000e+00> : vector<4x1xf32>
    %10 = tpu.matmul %2, %7, %cst_8 {dimension_numbers = #tpu.dot_dimension_numbers<[1], [0], [0], [1], [0, 0, 1, 1], [], []>} : vector<4x32xf32>, vector<32x1xf32>, vector<4x1xf32> -> vector<4x1xf32>
    %cst_9 = arith.constant 0.000000e+00 : f32
    %11 = vector.broadcast %cst_9 : f32 to vector<4x1xf32>
    %12 = arith.maximumf %10, %11 : vector<4x1xf32>
    %cst_10 = arith.constant dense<0.000000e+00> : vector<32x1xf32>
    %13 = tpu.matmul %3, %12, %cst_10 {dimension_numbers = #tpu.dot_dimension_numbers<[1], [0], [0], [1], [0, 0, 1, 1], [], []>} : vector<32x4xf32>, vector<4x1xf32>, vector<32x1xf32> -> vector<32x1xf32>
    %cst_11 = arith.constant dense<0.000000e+00> : vector<4x1xf32>
    %14 = tpu.matmul %2, %9, %cst_11 {dimension_numbers = #tpu.dot_dimension_numbers<[1], [0], [0], [1], [0, 0, 1, 1], [], []>} : vector<4x32xf32>, vector<32x1xf32>, vector<4x1xf32> -> vector<4x1xf32>
    %cst_12 = arith.constant 0.000000e+00 : f32
    %15 = vector.broadcast %cst_12 : f32 to vector<4x1xf32>
    %16 = arith.maximumf %14, %15 : vector<4x1xf32>
    %cst_13 = arith.constant dense<0.000000e+00> : vector<32x1xf32>
    %17 = tpu.matmul %3, %16, %cst_13 {dimension_numbers = #tpu.dot_dimension_numbers<[1], [0], [0], [1], [0, 0, 1, 1], [], []>} : vector<32x4xf32>, vector<4x1xf32>, vector<32x1xf32> -> vector<32x1xf32>
    %18 = arith.addf %13, %17 : vector<32x1xf32>
    %19 = arith.negf %18 : vector<32x1xf32>
    %20 = math.exp %19 : vector<32x1xf32>
    %cst_14 = arith.constant 1.000000e+00 : f32
    %21 = vector.broadcast %cst_14 : f32 to vector<32x1xf32>
    %22 = arith.addf %21, %20 : vector<32x1xf32>
    %23 = arith.divf %21, %22 : vector<32x1xf32>
    %c0_15 = arith.constant 0 : index
    %c0_16 = arith.constant 0 : index
    %c0_17 = arith.constant 0 : index
    %24 = vector.load %arg4[%c0_15, %c0_16, %c0_17] : memref<1x32x1xf32, #tpu.memory_space<vmem>>, vector<1x32x1xf32>
    %25 = vector.shape_cast %24 : vector<1x32x1xf32> to vector<32x1xf32>
    %26 = vector.shape_cast %23 : vector<32x1xf32> to vector<1x32x1xf32>
    tpu.vector_store %arg4[%c0_15, %c0_16, %c0_17], %26 {strides = array<i32>} : memref<1x32x1xf32, #tpu.memory_space<vmem>>, vector<1x32x1xf32>,
    return
  }
  func.func @transform_0(%arg0: i32) -> (i32, i32, i32) {
    %c0_i32 = arith.constant 0 : i32
    %c0_i32_0 = arith.constant 0 : i32
    %c0_i32_1 = arith.constant 0 : i32
    return %arg0, %c0_i32, %c0_i32_0 : i32, i32, i32
  }
  func.func @transform_1(%arg0: i32) -> (i32, i32) {
    %c0_i32 = arith.constant 0 : i32
    %c0_i32_0 = arith.constant 0 : i32
    %c0_i32_1 = arith.constant 0 : i32
    return %c0_i32, %c0_i32_0 : i32, i32
  }
  func.func @transform_2(%arg0: i32) -> (i32, i32) {
    %c0_i32 = arith.constant 0 : i32
    %c0_i32_0 = arith.constant 0 : i32
    %c0_i32_1 = arith.constant 0 : i32
    return %c0_i32, %c0_i32_0 : i32, i32
  }
  func.func @transform_3(%arg0: i32) -> (i32, i32, i32) {
    %c0_i32 = arith.constant 0 : i32
    %c0_i32_0 = arith.constant 0 : i32
    %c0_i32_1 = arith.constant 0 : i32
    return %arg0, %c0_i32, %c0_i32_0 : i32, i32, i32
  }
}

</mosaic_0001>

<bundles_post_ra>
// kernel: tpu_custom_call.1
= control target key start
LH: loop header
LB: loop body
LE: loop exit
PB: predicated region body
PF: predicated region fallthrough
CT: control target
= control target key end

     0   :  { %8 = vsyncpa [#allocation3], 0  ;;  %s1053_s0 = inlined_call_operand.hbm [shape: f32[2,32,256], index: 0, kind: input, shape index: {}]   ;;  %s1054_s1 = inlined_call_operand.vmem [shape: f32[4,32], index: 1, kind: input, shape index: {}]   ;;  %s1055_s2 = inlined_call_operand.vmem [shape: f32[32,4], index: 2, kind: input, shape index: {}]   ;;  %s1056_s3 = inlined_call_operand.vmem [shape: f32[2,32,1], index: 3, kind: output, shape index: {}]  }
   0x1   :  { %10 = vsyncpa [#allocation3 + $0x1], 0  ;;  %s920_s12 = smov 0   ;;  %s922_s13 = smov 0  }
   0x2   :  { %s924_s14 = smov 0   ;;  %s926_s15 = smov 0  }
   0x3 LB: > { %s939_s16 = sadd.s32 4294967295, %s892_s15   ;;  %s942_s17 = sadd.s32 1, %s892_s15   ;;  %s892_s15 = sphi %s926_s15, %s1063_s15   ;;  %s888_s14 = sphi %s924_s14, %s1062_s14   ;;  %s884_s13 = sphi %s922_s13, %s1061_s13   ;;  %s880_s12 = sphi %s920_s12, %s1060_s12  }
   0x4   : > { %s20_s18 = ssub.s32 %s892_s15, %s942_s17  ;;  %s23_s19 = sadd.s32 1, %s888_s14 }
   0x5   : > { %p21_p0 = scmp.eq.s32.totalorder %s20_s18, 0  ;;  %p30_p1 = scmp.ne.s32.totalorder %s888_s14, %s884_s13 }
   0x6   : > { %p31_p2 = scmp.eq.s32.totalorder %s892_s15, 0  ;;  %p36_p3 = scmp.ne.s32.totalorder %s884_s13, %s880_s12 }
   0x7   : > { %s952_s20 = scalar_select %p21_p0, %s888_s14, %s23_s19  }
   0x8   : > { %p32_p4 = por %p31_p2, %p30_p1  ;;  %p37_p5 = scmp.eq.s32.totalorder %s939_s16, 0 }
   0x9   : > { %p774_p6 = scmp.lt.s32.totalorder %s892_s15, 2  ;;  %s134_s22 = sand.u32 1, %s888_s14  }
   0xa   : > { %p956_p7 = por %p37_p5, %p36_p3  ;;  %s667_s23 = sshll.u32 %s134_s22, 6 }
   0xb   : > { %s692_s24 = sshll.u32 %s892_s15, 10  ;;  %s138_s28 = scalar_lea.vmem [#allocation2], %s667_s23 }
   0xc   : > { %s965_s27 = scalar_lea.hbm %s1053_s0, %s692_s24  ;;  %s145_s29 = sshll.u32 %s138_s28, 4  ;;  %s967_s29 = int_to_ptr.vmem [resolvable:$true] %s145_s29 }
   0xd   : > { %p969_p8 = pnand %p774_p6, %p32_p4  ;;  %s974_s4 = scalar_lea.sflag [#allocation3], %s134_s22 }
   0xe   : > { %s828_s5 = scalar_lea.hbm %s965_s27, 1024  ;;  %s833_s8 = scalar_lea.hbm %s1053_s0, 2048 }
   0xf   : > { %p829_p10 = scmp.ne.s32.totalorder %s965_s27, %s828_s5  ;;  %p830_p11 = pneg %p969_p8 }
  0x10   : > { %p834_p0 = scmp.lt.u32.totalorder %s965_s27, %s1053_s0  ;;  %p835_p1 = scmp.lt.u32.totalorder %s833_s8, %s828_s5 }
  0x11   : > { %p831_p12 = pnand %p830_p11, %p829_p10  ;;  %p837_p3 = scmp.lt.u32.totalorder %s828_s5, %s965_s27 }
  0x12   : > { %p836_p2 = por %p835_p1, %p834_p0 }
  0x13   : > { %p832_p13 = pneg %p831_p12 }
  0x14   : > { %p838_p4 = por %p837_p3, %p836_p2 }
  0x16   : > { %p839_p5 = pnand %p838_p4, %p832_p13 }
  0x18   : > { %842 = shalt.err (!%p839_p5)
}
  0x19   : > { %s843_s11 = scalar_lea.vmem %s967_s29, 1024  ;;  %s894_s12 = smov [#allocation2]  }
  0x1a   : > { %p844_p6 = scmp.ne.s32.totalorder %s967_s29, %s843_s11  ;;  %s848_s18 = sshll.u32 %s894_s12, 4  ;;  %s849_s18 = int_to_ptr.vmem [resolvable:$false] %s848_s18 }
  0x1b   : > { %s850_s19 = scalar_lea.vmem %s849_s18, 2048  ;;  %p851_p9 = scmp.lt.s32.totalorder %s967_s29, %s849_s18 }
  0x1c   : > { %p846_p10 = pnand %p844_p6, %p830_p11  ;;  %p852_p0 = scmp.lt.s32.totalorder %s850_s19, %s843_s11 }
  0x1e   : > { %p847_p12 = pneg %p846_p10  ;;  %p853_p1 = por %p852_p0, %p851_p9 }
  0x20   : > { %p854_p2 = pnand %p853_p1, %p847_p12 }
  0x22   : > { %857 = shalt.err (!%p854_p2)
}
  0x23   : > { %s895_s22 = smov 256   ;;  %s896_s23 = smov 16  }
  0x24   : > { %773 = dma.hbm_to_vmem [thread:$0]  (!%p969_p8), %s965_s27, 1024, %s967_s29, %s974_s4, %s895_s22, %s895_s22, %s896_s23  }
  0x25   : > { %p153_p11 = scmp.lt.s32.totalorder %s892_s15, 3  ;;  %p1059_p13 = scmp.ge.s32.totalorder %s892_s15, 1 }
  0x27   : > { %p154_p3 = pnand %p1059_p13, %p153_p11 }
  0x28   : > { %s159_s24 = sand.u32 (!%p154_p3), 1, %s884_s13  }
  0x29   : > { %157 = sbr.rel (%p154_p3) target bundleno = 686 (0x2ae), region = 32  ;;  %s671_s25 = sshll.u32 (!%p154_p3), %s159_s24, 6 }
  0x2a   : > { %s160_s26 = scalar_lea.sflag (!%p154_p3), [#allocation3], %s159_s24  ;;  %s163_s28 = scalar_lea.vmem (!%p154_p3), [#allocation2], %s671_s25 }
  0x30   : > { %875 = dma.done.wait (%p956_p7), %s160_s26, 1024  }
  0x31   : > { %877 = vsyncadd (%p956_p7), %s160_s26, 4294966272  ;;  %v195_v0 = vld [vmem:[%s163_s28 + $0x20] sm:$0xff]  ;;  %v196_v1 = vld [vmem:[%s163_s28 + $0x28] sm:$0xff]  ;;  %v897_v16 = vmov 0.0|0.0   ;;  %vm898_vm0 = vmmov 0   ;;  %v899_v17 = vmov 0.0  }
  0x32   : > { %v191_v2 = vld [vmem:[%s163_s28] sm:$0xff]  ;;  %v210_v3 = vadd.f32 %v196_v1, %v195_v0  ;;  %v192_v4 = vld [vmem:[%s163_s28 + $0x8] sm:$0xff]  ;;  %v197_v5 = vld [vmem:[%s163_s28 + $0x30] sm:$0xff]  ;;  %v226_v15 = vmax.f32 %v195_v0, %v196_v1  ;;  %752 = vmatprep.subr.bf16.mxu1 %v897_v16  ;;  %722 = vmatprep.mubr.msk.f32.mxu1 %vm898_vm0, %v899_v17  ;;  %vm232_vm1 = vcmask 261120   ;;  %vm378_vm2 = vcmask 31744   ;;  %p186_p7 = scmp.lt.s32.totalorder %s939_s16, 1 }
  0x33   : > { %v198_v6 = vld [vmem:[%s163_s28 + $0x38] sm:$0xff]  ;;  %v204_v7 = vadd.f32 %v192_v4, %v191_v2  ;;  %v193_v8 = vld [vmem:[%s163_s28 + $0x10] sm:$0xff]  ;;  %v220_v13 = vmax.f32 %v191_v2, %v192_v4  ;;  %v199_v31 = vld [vmem:[%s1054_s1] sm:$0xf]  ;;  %vm391_vm3 = vcmask 1043456   ;;  %vm592_vm4 = vcmask 7168  }
  0x34   : > { %v194_v9 = vld [vmem:[%s163_s28 + $0x18] sm:$0xff]  ;;  %211 = vadd.xlane.f32.xlu1 %v210_v3  ;;  %v213_v10 = vadd.f32 %v198_v6, %v197_v5  ;;  %v229_v14 = vmax.f32 %v197_v5, %v198_v6  ;;  %v200_v35 = vld [vmem:[%s1055_s2] sm:$0xff]  ;;  %v201_v41 = vld [vmem:[%s1055_s2 + $0x8] sm:$0xff]  ;;  %s1065_s16 = smov (!%p186_p7, %s939_s16), 1 }
  0x35   : > { %205 = vadd.xlane.f32.xlu0 %v204_v7  ;;  %v207_v11 = vadd.f32 %v194_v9, %v193_v8  ;;  %v223_v12 = vmax.f32 %v193_v8, %v194_v9  ;;  %738 = vmatprep.mubr.msk.f32.mxu0 %vm378_vm2, %v200_v35  ;;  %v202_v43 = vld [vmem:[%s1055_s2 + $0x10] sm:$0xff]  ;;  %v203_v44 = vld [vmem:[%s1055_s2 + $0x18] sm:$0xff]  ;;  %s693_s9 = sshll.u32 %s1065_s16, 5 }
  0x36   : > { %s190_s12 = scalar_lea.vmem %s1056_s3, %s693_s9 }
  0x38   : > { %214 = vadd.xlane.f32.xlu1 %v213_v10 }
  0x39   : > { %208 = vadd.xlane.f32.xlu0 %v207_v11 }
  0x3c   : > { %224 = vmax.xlane.f32.xlu1 %v223_v12 }
  0x3d   : > { %221 = vmax.xlane.f32.xlu0 %v220_v13 }
  0x40   : > { %230 = vmax.xlane.f32.xlu1 %v229_v14 }
  0x41   : > { %227 = vmax.xlane.f32.xlu0 %v226_v15 }
  0xc1   : > { %v212_v18 = vpop.xlane.xlu1 %211 }
  0xc2   : > { %v206_v19 = vpop.xlane.xlu0 %205  ;;  %v218_v24 = vmul.f32 0.00390625, %v212_v18 }
  0xc3   : > { %v216_v22 = vmul.f32 0.00390625, %v206_v19 }
  0xc5   : > { %v215_v20 = vpop.xlane.xlu1 %214 }
  0xc6   : > { %v209_v21 = vpop.xlane.xlu0 %208  ;;  %v219_v25 = vmul.f32 0.00390625, %v215_v20 }
  0xc7   : > { %v217_v23 = vmul.f32 0.00390625, %v209_v21 }
  0xc8   : > { %v756_v29 = vpack.c.bf16 %v219_v25, %v218_v24 }
  0xc9   : > { %v753_v26 = vpack.c.bf16 %v217_v23, %v216_v22  ;;  %v225_v27 = vpop.xlane.xlu1 %224 }
  0xca   : > { %v222_v28 = vpop.xlane.xlu0 %221 }
  0xcb   : > { %754 = vmatpush3.bf16.msra.mxu1 %v753_v26  ;;  %v759_v30 = vpack.c.bf16 %v225_v27, %v222_v28 }
  0xcc   : > { %755 = vmatprep.subr.bf16.mxu1 %v897_v16 }
  0xcd   : > { %v231_v32 = vpop.xlane.xlu1 %230 }
  0xce   : > { %v228_v33 = vpop.xlane.xlu0 %227 }
  0xcf   : > { %757 = vmatpush3.bf16.msra.mxu1 %v756_v29  ;;  %v762_v34 = vpack.c.bf16 %v231_v32, %v228_v33 }
  0xd0   : > { %758 = vmatprep.subr.bf16.mxu1 %v897_v16 }
  0xd2   : > { %723 = vmatmul.mubr.msk.f32.vlgmr.msra.gmra.mrb[0].mxu1 %vm232_vm1, %v199_v31 }
  0xd3   : > { %760 = vmatpush3.bf16.msra.mxu1 %v759_v30  ;;  %733 = vmatprep.mubr.msk.f32.mxu1 %vm898_vm0, %v899_v17 }
  0xd4   : > { %761 = vmatprep.subr.bf16.mxu1 %v897_v16 }
  0xd7   : > { %763 = vmatpush3.bf16.msra.mxu1 %v762_v34 }
  0xda   : > { %734 = vmatmul.mubr.msk.f32.vlgmr.msra.gmra.mrb[2].mxu1 %vm232_vm1, %v199_v31 }
 0x1a5   : > { %v302_v36 = vpop.f32.mrb[0].mxu1 }
 0x1a6   : > { %v724_v37 = vpop.f32.mrb[1].mxu1  ;;  %v306_v42 = vmax.f32 %v302_v36, 0.0 }
 0x1ad   : > { %v373_v38 = vpop.f32.mrb[2].mxu1 }
 0x1ae   : > { %v377_v39 = vmax.f32 %v373_v38, 0.0  ;;  %v735_v40 = vpop.f32.mrb[3].mxu1 }
 0x1b0   : > { %736 = vmatprep.subr.msk.mxu0 %vm391_vm3, %v377_v39 }
 0x1b1   : > { %737 = vmatpush3.msk.msra.mxu0 %vm391_vm3, %v377_v39 }
 0x1b2   : > { %739 = vmatmul.mubr.msk.f32.vlgmr.msra.gmra.mrb[0].mxu0 %vm378_vm2, %v201_v41  ;;  %744 = vmatprep.subr.msk.mxu0 %vm391_vm3, %v306_v42 }
 0x1b3   : > { %745 = vmatpush3.msk.msra.mxu0 %vm391_vm3, %v306_v42  ;;  %741 = vmatprep.mubr.msk.f32.mxu0 %vm378_vm2, %v202_v43 }
 0x1b6   : > { %742 = vmatmul.mubr.msk.f32.gmra.mrb[2].mxu0 %vm378_vm2, %v203_v44 }
 0x1b7   : > { %746 = vmatprep.mubr.msk.f32.mxu0 %vm378_vm2, %v200_v35 }
 0x1ba   : > { %747 = vmatmul.mubr.msk.f32.vlgmr.msra.gmra.mrb[0].mxu0 %vm378_vm2, %v201_v41 }
 0x1bb   : > { %749 = vmatprep.mubr.msk.f32.mxu0 %vm378_vm2, %v202_v43 }
 0x1be   : > { %750 = vmatmul.mubr.msk.f32.gmra.mrb[2].mxu0 %vm378_vm2, %v203_v44 }
 0x28d   : > { %v748_v45 = vpop.f32.mrb[0].mxu0 }
 0x28e   : > { %v687_v46 = vmul.f32 -1.442695, %v748_v45  ;;  %v549_v47 = vpop.f32.mrb[1].mxu0 }
 0x28f   : > { %v686_v48 = vmul.f32 -1.442695, %v549_v47 }
 0x290   : > { %812 = vpow2.f32 %v687_v46 }
 0x291   : > { %814 = vpow2.f32 %v686_v48  ;;  %v751_v49 = vpop.f32.mrb[2].mxu0 }
 0x292   : > { %v689_v50 = vmul.f32 -1.442695, %v751_v49  ;;  %v559_v51 = vpop.f32.mrb[3].mxu0 }
 0x293   : > { %v688_v52 = vmul.f32 -1.442695, %v559_v51 }
 0x294   : > { %816 = vpow2.f32 %v689_v50 }
 0x295   : > { %818 = vpow2.f32 %v688_v52 }
 0x29a   : > { %v813_v53 = vpop.eup %812 }
 0x29b   : > { %v815_v54 = vpop.eup %814  ;;  %v581_v55 = vadd.f32 1.0, %v813_v53 }
 0x29c   : > { %v580_v56 = vadd.f32 1.0, %v815_v54 }
 0x29d   : > { %820 = vrcp.f32 %v581_v55 }
 0x29e   : > { %v817_v57 = vpop.eup %816  ;;  %822 = vrcp.f32 %v580_v56 }
 0x29f   : > { %v819_v58 = vpop.eup %818  ;;  %v583_v59 = vadd.f32 1.0, %v817_v57 }
 0x2a0   : > { %v582_v60 = vadd.f32 1.0, %v819_v58 }
 0x2a1   : > { %824 = vrcp.f32 %v583_v59 }
 0x2a2   : > { %826 = vrcp.f32 %v582_v60 }
 0x2a7   : > { %v821_v61 = vpop.eup %820 }
 0x2a8   : > { %v823_v62 = vpop.eup %822  ;;  %594 = vst.msk [vmem:[%s190_s12 + $0x8] sm:$0xff] %vm592_vm4, %v821_v61 }
 0x2a9   : > { %593 = vst.msk [vmem:[%s190_s12] sm:$0xff] %vm592_vm4, %v823_v62 }
 0x2ab   : > { %v825_v63 = vpop.eup %824 }
 0x2ac   : > { %v827_v0 = vpop.eup %826  ;;  %596 = vst.msk [vmem:[%s190_s12 + $0x18] sm:$0xff] %vm592_vm4, %v825_v63 }
 0x2ad   : > { %595 = vst.msk [vmem:[%s190_s12 + $0x10] sm:$0xff] %vm592_vm4, %v827_v0 }
 0x2ae PF: > { %p13_p8 = scmp.ge.s32.totalorder %s942_s17, 4   ;;  %s1060_s12 = smov %s884_s13 }
 0x2af   : > { %s1061_s13 = smov %s888_s14  ;;  %s1062_s14 = smov %s952_s20 }
 0x2b0   : > { %s1063_s15 = smov %s942_s17  ;;  %15 = sbr.rel (!%p13_p8) target bundleno = 3 (0x3), region = 72 }
 0x2b7   :  { %618 = vsyncpa [#allocation3], 1 }
 0x2b8   :  { %620 = vsyncpa [#allocation3 + $0x1], 1 }

</bundles_post_ra>
